<compile_context>
chip_gen: v6e
topology: v6e:2x2x1
jax: 0.10.0
libtpu: 0.0.40
codegen_flags: <defaults>
</compile_context>

<pallas_src>
import functools

import jax
import jax.numpy as jnp
import numpy as np
from jax.experimental import pallas as pl
from jax.experimental.pallas import tpu as pltpu


def _ada_rms_norm_kernel(x_ref, scale_ref, o_ref, *, eps):
    # x_ref:     (bt, ts, F) tile of x
    # scale_ref: (bt, F)     f32 adaptive scale (already  cond @ W.T + 1)
    #
    # NOTE: rows are fully independent. Partial tail tiles (S or B not divisible
    # by the block) read OOB-padded rows and are clipped on writeback — safe
    # only while no cross-row op is added here.
    x = x_ref[...]                                  # (bt, ts, F), native dtype
    scale = scale_ref[...]                          # (bt, F), f32

    # RMS statistics in float32 (matches torch.promote_types(x, scale, float32)).
    xf = x.astype(jnp.float32)
    mean_sq = jnp.mean(xf * xf, axis=-1, keepdims=True)    # (bt, ts, 1)
    inv = jax.lax.rsqrt(mean_sq + eps)                     # EUP slot (free-ish)

    # Torch-exact epilogue: single downcast of (scale * rsqrt) to x.dtype, then
    # one multiply in x.dtype.  (A split bf16 two-multiply variant trims ~1.5
    # VALU ops/elem on v7x but deviates from torch's single-downcast numerics
    # and v5e's VPU has no bf16 — keep the f32 path.)
    full_scale = (scale[:, None, :] * inv).astype(x.dtype)  # (bt, ts, F)
    o_ref[...] = (x * full_scale).astype(o_ref.dtype)


def _vmem_budget_bytes():
    """~75% of physical per-core VMEM (generation-aware: ~96 MiB on v5e/v6e,
    ~48 MiB on v7x), leaving headroom for compiler temporaries."""
    try:
        cap = int(pltpu.get_tpu_info().vmem_capacity_bytes)
    except Exception:
        cap = 64 << 20          # conservative fallback = v7x per-TC physical VMEM
    return max(16 << 20, (cap * 3) // 4)


def _plan_tiles(B, S, F, itemsize, budget, tile_s=None, block_b=None):
    """Pick (bt, ts) so one x block is ~4 MiB, shrinking if the double-buffered
    in/out tiles plus f32 upcast temporaries would not fit the VMEM budget."""
    # Sublane multiple for the second-to-last (S) block dim, dtype-aware:
    # int8/fp8 pack 32 rows per vreg, bf16 packs 16, f32 packs 8.
    mult = 32 if itemsize == 1 else (16 if itemsize == 2 else 8)
    row_bytes = max(1, F * itemsize)
    seq_bytes = S * row_bytes
    target = 4 << 20            # ~4 MiB blocks: >=85-90% of HBM roofline on all gens

    while True:
        if block_b is not None or tile_s is not None:
            bt = block_b if block_b is not None else 1
            ts = tile_s if tile_s is not None else S
        elif seq_bytes >= target:
            # Large per-batch slab: one batch element per step, tile along S.
            bt = 1
            ts = min(S, max(mult, target // row_bytes))
            if ts < S:
                ts = max(mult, (ts // mult) * mult)
                ts = min(ts, S)
        else:
            # Small S*F: pack multiple batch elements per step to keep DMAs big.
            ts = S
            bt = int(min(B, max(1, target // seq_bytes)))
            if bt < B:
                # keep the (bt, F) scale block sublane-friendly; bt == 1 also fine
                bt = max(1, (bt // 8) * 8)

        block_bytes = bt * ts * F * itemsize
        # double-buffered x-in + out blocks, double-buffered scale block, plus
        # headroom for the f32 upcast/reduce temporaries of one block.
        need = 4 * block_bytes + 4 * bt * F * 4 + 2 * bt * ts * F * 4
        done = (need <= budget
                or (bt == 1 and ts <= mult)
                or tile_s is not None
                or block_b is not None)
        if done:
            return bt, ts, need
        target //= 2


def ada_rms_norm(x, cond, weight, eps=1e-6, tile_s=None, block_b=None):
    """x: (B, S, F), cond: (B, C), weight: (F, C) as in nn.Linear(C, F, bias=False)."""
    B, S, F = x.shape
    itemsize = jnp.dtype(x.dtype).itemsize

    # Adaptive scale hoisted out of the kernel: one small matmul computed to the
    # nn.Linear output dtype, "+ 1" in that dtype (matching torch), then one
    # promotion to f32 for the kernel.
    lin_dtype = jnp.promote_types(cond.dtype, weight.dtype)
    lin = jnp.einsum("bc,fc->bf", cond, weight,
                     preferred_element_type=jnp.float32).astype(lin_dtype)
    scale = (lin + 1).astype(jnp.float32)                   # (B, F) f32

    budget = _vmem_budget_bytes()
    bt, ts, need = _plan_tiles(B, S, F, itemsize, budget, tile_s, block_b)
    grid = (pl.cdiv(B, bt), pl.cdiv(S, ts))

    # ~1.25x headroom over the accounted need, never above the generation budget.
    vmem_limit = int(min(budget, max(8 << 20, (need * 5) // 4)))

    cost = pl.CostEstimate(
        flops=int(4 * B * S * F),
        transcendentals=int(B * S),
        bytes_accessed=int(2 * B * S * F * itemsize + B * F * 4),
    )

    kernel = functools.partial(_ada_rms_norm_kernel, eps=eps)
    return pl.pallas_call(
        kernel,
        out_shape=jax.ShapeDtypeStruct((B, S, F), x.dtype),
        grid_spec=pltpu.PrefetchScalarGridSpec(
            num_scalar_prefetch=0,
            grid=grid,
            in_specs=[
                pl.BlockSpec((bt, ts, F), lambda b, s: (b, s, 0)),
                # Constant block index along the inner s-loop: the pipeline
                # elides its re-copy, so the scale is effectively resident.
                pl.BlockSpec((bt, F), lambda b, s: (b, 0)),
            ],
            out_specs=pl.BlockSpec((bt, ts, F), lambda b, s: (b, s, 0)),
        ),
        compiler_params=pltpu.CompilerParams(
            dimension_semantics=("parallel", "parallel"),
            vmem_limit_bytes=vmem_limit,
        ),
        cost_estimate=cost,
    )(x, scale)


def ada_rms_norm_ref(x, cond, weight, eps=1e-6):
    """Pure-JAX reference mirroring the PyTorch forward."""
    lin_dtype = jnp.promote_types(cond.dtype, weight.dtype)
    lin = jnp.einsum("bc,fc->bf", cond, weight,
                     preferred_element_type=jnp.float32).astype(lin_dtype)
    scale = lin[:, None, :] + 1
    dtype = jnp.promote_types(jnp.promote_types(x.dtype, scale.dtype), jnp.float32)
    mean_sq = jnp.mean(x.astype(dtype) ** 2, axis=-1, keepdims=True)
    full = scale.astype(dtype) * jax.lax.rsqrt(mean_sq + eps)
    return (x * full.astype(x.dtype)).astype(x.dtype)


if __name__ == "__main__":
    eps = 1e-6
    key = jax.random.PRNGKey(0)

    # --- Test 1: small f32 shape, batch-packing path (block = full array) ---
    B, S, F, C = 2, 8, 32, 16
    kx, kc, kw = jax.random.split(key, 3)
    x = jax.random.normal(kx, (B, S, F), dtype=jnp.float32)
    cond = jax.random.normal(kc, (B, C), dtype=jnp.float32)
    # nn.Linear(cond_features, features, bias=False) weight shape: (F, C).
    # The module zero-inits this weight; small non-zero values here so the
    # adaptive-scale path is actually exercised.
    weight = 0.05 * jax.random.normal(kw, (F, C), dtype=jnp.float32)

    out = jax.block_until_ready(ada_rms_norm(x, cond, weight, eps))
    ref = ada_rms_norm_ref(x, cond, weight, eps)
    np.testing.assert_allclose(np.asarray(out), np.asarray(ref),
                               rtol=1e-5, atol=1e-5)

    # --- Test 2: bf16, forced S-tiling with a partial tail tile, F=128 ---
    B2, S2, F2, C2 = 2, 24, 128, 16
    k2 = jax.random.split(key, 4)
    x2 = jax.random.normal(k2[0], (B2, S2, F2), dtype=jnp.bfloat16)
    cond2 = jax.random.normal(k2[1], (B2, C2), dtype=jnp.bfloat16)
    weight2 = (0.05 * jax.random.normal(k2[2], (F2, C2), dtype=jnp.float32)
               ).astype(jnp.bfloat16)

    out2 = jax.block_until_ready(
        ada_rms_norm(x2, cond2, weight2, eps, tile_s=16, block_b=1))
    ref2 = ada_rms_norm_ref(x2, cond2, weight2, eps)
    np.testing.assert_allclose(np.asarray(out2, dtype=np.float32),
                               np.asarray(ref2, dtype=np.float32),
                               rtol=2e-2, atol=2e-2)

    # --- Test 3: bf16, auto planner packs multiple batch elements per step ---
    B3, S3, F3, C3 = 4, 16, 128, 8
    k3 = jax.random.split(key, 3)
    x3 = jax.random.normal(k3[0], (B3, S3, F3), dtype=jnp.bfloat16)
    cond3 = jax.random.normal(k3[1], (B3, C3), dtype=jnp.bfloat16)
    weight3 = (0.05 * jax.random.normal(k3[2], (F3, C3), dtype=jnp.float32)
               ).astype(jnp.bfloat16)

    out3 = jax.block_until_ready(ada_rms_norm(x3, cond3, weight3, eps))
    ref3 = ada_rms_norm_ref(x3, cond3, weight3, eps)
    np.testing.assert_allclose(np.asarray(out3, dtype=np.float32),
                               np.asarray(ref3, dtype=np.float32),
                               rtol=2e-2, atol=2e-2)

    print("KERNEL_OK")
</pallas_src>

<mosaic_0001>
module attributes {stable_mosaic.version = 11 : i64} {
  func.func @_ada_rms_norm_kernel(%arg0: i32, %arg1: i32, %arg2: memref<2x8x32xf32, #tpu.memory_space<vmem>>, %arg3: memref<2x32xf32, #tpu.memory_space<vmem>>, %arg4: memref<2x8x32xf32, #tpu.memory_space<vmem>>) attributes {dimension_semantics = [#tpu.dimension_semantics<parallel>, #tpu.dimension_semantics<parallel>], iteration_bounds = array<i64: 1, 1>, scalar_prefetch = 0 : i64, scratch_operands = 0 : i64, tpu.core_type = #tpu.core_type<tc>, window_params = [{transform_indices = @transform_0, window_bounds = array<i64: 2, 8, 32>}, {transform_indices = @transform_1, window_bounds = array<i64: 2, 32>}, {transform_indices = @transform_2, window_bounds = array<i64: 2, 8, 32>}]} {
    %c0 = arith.constant 0 : index
    %c0_0 = arith.constant 0 : index
    %c0_1 = arith.constant 0 : index
    %0 = vector.load %arg2[%c0, %c0_0, %c0_1] : memref<2x8x32xf32, #tpu.memory_space<vmem>>, vector<2x8x32xf32>
    %c0_2 = arith.constant 0 : index
    %c0_3 = arith.constant 0 : index
    %1 = vector.load %arg3[%c0_2, %c0_3] : memref<2x32xf32, #tpu.memory_space<vmem>>, vector<2x32xf32>
    %2 = arith.mulf %0, %0 : vector<2x8x32xf32>
    %cst = arith.constant dense<0.000000e+00> : vector<2x8xf32>
    %3 = vector.multi_reduction <add>, %2, %cst [2] : vector<2x8x32xf32> to vector<2x8xf32>
    %4 = vector.shape_cast %3 : vector<2x8xf32> to vector<2x8x1xf32>
    %cst_4 = arith.constant 3.200000e+01 : f32
    %5 = vector.broadcast %cst_4 : f32 to vector<2x8x1xf32>
    %6 = arith.divf %4, %5 : vector<2x8x1xf32>
    %cst_5 = arith.constant 9.99999997E-7 : f32
    %7 = vector.broadcast %cst_5 : f32 to vector<2x8x1xf32>
    %8 = arith.addf %6, %7 : vector<2x8x1xf32>
    %9 = math.rsqrt %8 : vector<2x8x1xf32>
    %10 = vector.shape_cast %1 : vector<2x32xf32> to vector<2x1x32xf32>
    %11 = vector.broadcast %10 : vector<2x1x32xf32> to vector<2x8x32xf32>
    %12 = vector.broadcast %9 : vector<2x8x1xf32> to vector<2x8x32xf32>
    %13 = arith.mulf %11, %12 : vector<2x8x32xf32>
    %14 = arith.mulf %0, %13 : vector<2x8x32xf32>
    %c0_6 = arith.constant 0 : index
    %c0_7 = arith.constant 0 : index
    %c0_8 = arith.constant 0 : index
    %15 = vector.load %arg4[%c0_6, %c0_7, %c0_8] : memref<2x8x32xf32, #tpu.memory_space<vmem>>, vector<2x8x32xf32>
    tpu.vector_store %arg4[%c0_6, %c0_7, %c0_8], %14 {strides = array<i32>} : memref<2x8x32xf32, #tpu.memory_space<vmem>>, vector<2x8x32xf32>,
    return
  }
  func.func @transform_0(%arg0: i32, %arg1: i32) -> (i32, i32, i32) {
    %c0_i32 = arith.constant 0 : i32
    %c0_i32_0 = arith.constant 0 : i32
    return %arg0, %arg1, %c0_i32 : i32, i32, i32
  }
  func.func @transform_1(%arg0: i32, %arg1: i32) -> (i32, i32) {
    %c0_i32 = arith.constant 0 : i32
    %c0_i32_0 = arith.constant 0 : i32
    return %arg0, %c0_i32 : i32, i32
  }
  func.func @transform_2(%arg0: i32, %arg1: i32) -> (i32, i32, i32) {
    %c0_i32 = arith.constant 0 : i32
    %c0_i32_0 = arith.constant 0 : i32
    return %arg0, %arg1, %c0_i32 : i32, i32, i32
  }
}

</mosaic_0001>

<bundles_post_ra>
// kernel: tpu_custom_call.1
= control target key start
LH: loop header
LB: loop body
LE: loop exit
PB: predicated region body
PF: predicated region fallthrough
CT: control target
= control target key end

     0   :  { %7 = vsyncpa [#allocation3], 0  ;;  %s231_s0 = inlined_call_operand.hbm [shape: f32[2,8,32], index: 0, kind: input, shape index: {}]   ;;  %s232_s1 = inlined_call_operand.hbm [shape: f32[2,32], index: 1, kind: input, shape index: {}]   ;;  %s233_s2 = inlined_call_operand.hbm [shape: f32[2,8,32], index: 2, kind: output, shape index: {}]  }
   0x1   :  { %8 = vsyncpa [#allocation6], 0 }
   0x2   :  { %9 = vsyncpa [#allocation4], 0  ;;  %s191_s9 = smov [#allocation2]  }
   0x3   :  { %s15_s10 = sshll.u32 %s191_s9, 4  ;;  %s16_s10 = int_to_ptr.vmem [resolvable:$true] %s15_s10 }
   0x4   :  { %s133_s11 = scalar_lea.vmem %s16_s10, 256  ;;  %p138_p1 = scmp.lt.s32.totalorder %s16_s10, %s16_s10 }
   0x5   :  { %p134_p0 = scmp.ne.s32.totalorder %s16_s10, %s133_s11  ;;  %p139_p2 = scmp.lt.s32.totalorder %s133_s11, %s133_s11 }
   0x7   :  { %p140_p3 = por %p139_p2, %p138_p1 }
   0x9   :  { %p141_p4 = pnand %p140_p3, %p134_p0 }
   0xb   :  { %144 = shalt.err (!%p141_p4)
}
   0xc   :  { %s192_s12 = smov 128   ;;  %s193_s13 = smov 8  }
   0xd   :  { %21 = dma.hbm_to_vmem [thread:$0]  %s231_s0, 256, %s16_s10, [#allocation3], %s192_s12, %s192_s12, %s193_s13  }
   0xe   :  { %s194_s16 = smov [#allocation5]  }
   0xf   :  { %s28_s17 = sshll.u32 %s194_s16, 4  ;;  %s29_s17 = int_to_ptr.vmem [resolvable:$true] %s28_s17 }
  0x10   :  { %s153_s18 = scalar_lea.vmem %s29_s17, 32  ;;  %p158_p6 = scmp.lt.s32.totalorder %s29_s17, %s29_s17 }
  0x11   :  { %p154_p5 = scmp.ne.s32.totalorder %s29_s17, %s153_s18  ;;  %p159_p7 = scmp.lt.s32.totalorder %s153_s18, %s153_s18 }
  0x13   :  { %p160_p8 = por %p159_p7, %p158_p6 }
  0x15   :  { %p161_p9 = pnand %p160_p8, %p154_p5 }
  0x17   :  { %164 = shalt.err (!%p161_p9)
}
  0x18   :  { %31 = dma.hbm_to_vmem [thread:$0]  %s232_s1, 32, %s29_s17, [#allocation6]  }
  0x19   :  { %185 = dma.done.wait [#allocation3], 256  }
  0x1a   :  { %186 = vsyncadd [#allocation3], 4294967040 }
  0x1b   :  { %187 = dma.done.wait [#allocation6], 32  }
  0x1c   :  { %188 = vsyncadd [#allocation6], 4294967264  ;;  %v38_v0 = vld [vmem:[#allocation2] sm:$0xff]  ;;  %vm43_vm0 = vcmask 261120   ;;  %v39_v1 = vld [vmem:[#allocation2 + $0x8] sm:$0xff]  ;;  %v69_v8 = vlaneseq  ;;  %s196_s0 = smov [#allocation7]  }
  0x1d   :  { %v41_v2 = vmul.f32 %v38_v0, %v38_v0  ;;  %v42_v3 = vmul.f32 %v39_v1, %v39_v1  ;;  %v195_v6 = vmov 1966171168   ;;  %v114_v18 = vld.sshfl [vmem:[#allocation5] sm:$0x11 pattern:$0x75316420] }
  0x1e   :  { %v67_v7 = vunpack.c.l.s4 %v195_v6  ;;  %v70_v13 = vshrl.u32 %v69_v8, 7  ;;  %v65_v19 = vcombine.high %v114_v18, %v114_v18  ;;  %s101_s1 = sshll.u32 %s196_s0, 4  ;;  %s102_s1 = int_to_ptr.vmem [resolvable:$true] %s101_s1 }
  0x1f   :  { %v44_v4 = vsel %vm43_vm0, %v41_v2, 0.0  ;;  %v47_v5 = vsel %vm43_vm0, %v42_v3, 0.0  ;;  %s165_s21 = scalar_lea.vmem %s102_s1, 256  ;;  %p170_p11 = scmp.lt.s32.totalorder %s102_s1, %s102_s1 }
  0x20   :  { %45 = vadd.xlane.f32.xlu0 %v44_v4  ;;  %v68_v12 = vunpack.c.0.s8 %v67_v7  ;;  %v82_v21 = vsub.s32 0, %v70_v13  ;;  %p166_p10 = scmp.ne.s32.totalorder %s102_s1, %s165_s21  ;;  %p171_p12 = scmp.lt.s32.totalorder %s165_s21, %s165_s21 }
  0x22   :  { %v71_v17 = vsub.s32 %v68_v12, %v70_v13  ;;  %p172_p13 = por %p171_p12, %p170_p11 }
  0x24   :  { %48 = vadd.xlane.f32.xlu0 %v47_v5  ;;  %v72_v20 = vrot.slane %v114_v18, %v71_v17  ;;  %v79_v22 = vrot.slane %v65_v19, %v71_v17  ;;  %p173_p0 = pnand %p172_p13, %p166_p10 }
  0x26   :  { %v83_v23 = vrot.slane %v72_v20, %v82_v21  ;;  %v87_v25 = vrot.slane %v79_v22, %v82_v21 }
  0xa9   :  { %v46_v9 = vpop.xlane.xlu0 %45 }
  0xaa   :  { %v51_v10 = vmul.f32 0.03125, %v46_v9 }
  0xac   :  { %v53_v11 = vadd.f32 1e-06, %v51_v10 }
  0xad   :  { %v49_v14 = vpop.xlane.xlu0 %48 }
  0xae   :  { %121 = vrsqrt.f32 %v53_v11  ;;  %v52_v15 = vmul.f32 0.03125, %v49_v14 }
  0xb0   :  { %v54_v16 = vadd.f32 1e-06, %v52_v15 }
  0xb2   :  { %123 = vrsqrt.f32 %v54_v16 }
  0xbb   :  { %v122_v24 = vpop.eup %121 }
  0xbc   :  { %v90_v26 = vmul.f32 %v122_v24, %v83_v23 }
  0xbe   :  { %v92_v27 = vmul.f32 %v90_v26, %v38_v0 }
  0xbf   :  { %v124_v28 = vpop.eup %123 }
  0xc0   :  { %v91_v29 = vmul.f32 %v124_v28, %v87_v25  ;;  %94 = vst.msk [vmem:[#allocation7] sm:$0xff] %vm43_vm0, %v92_v27 }
  0xc2   :  { %v93_v30 = vmul.f32 %v91_v29, %v39_v1 }
  0xc4   :  { %95 = vst.msk [vmem:[#allocation7 + $0x8] sm:$0xff] %vm43_vm0, %v93_v30 }
  0xc5   :  { %176 = shalt.err (!%p173_p0)
}
  0xc6   :  { %107 = dma.vmem_to_hbm [thread:$0]  %s102_s1, 256, %s233_s2, [#allocation4], %s192_s12, %s192_s12, %s193_s13  }
  0xc7   :  { %189 = dma.done.wait [#allocation4], 256  }
  0xc8   :  { %190 = vsyncadd [#allocation4], 4294967040 }
  0xc9   :  { %111 = vsyncpa [#allocation3], 1 }
  0xca   :  { %112 = vsyncpa [#allocation6], 1 }
  0xcb   :  { %113 = vsyncpa [#allocation4], 1 }

</bundles_post_ra>
